<compile_context>
chip_gen: v5e
topology: v5e:2x2
jax: 0.10.0
libtpu: 0.0.40
codegen_flags: <defaults>
</compile_context>

<pallas_src>
import functools

import numpy as np
import jax
import jax.numpy as jnp
from jax.experimental import pallas as pl
from jax.experimental.pallas import tpu as pltpu

# Python-float literals only (jnp scalars would become captured kernel consts).
_NEG = -1e30          # mask fill for roads not assigned to a region
_NEG_THRESH = -1e29   # rows whose running max stays below this are "empty"


def _road2region_kernel(summ_ref, q_ref, kt_ref, v_ref, bias_ref, out_ref,
                        m_ref, l_ref, acc_ref, *, compute_dtype):
    r = pl.program_id(1)

    @pl.when(r == 0)
    def _init():
        m_ref[...] = jnp.full(m_ref.shape, -jnp.inf, m_ref.dtype)
        l_ref[...] = jnp.zeros(l_ref.shape, l_ref.dtype)
        acc_ref[...] = jnp.zeros(acc_ref.shape, acc_ref.dtype)

    # part3[g, j] = q[g] . k[:, j]   (k is stored pre-transposed: [Hk, Rt]).
    part3 = jnp.dot(q_ref[...], kt_ref[...],
                    preferred_element_type=jnp.float32)             # [Gt, Rt]
    # bias already holds (part1 + part2) / sqrt(d), -1e30 where not assigned.
    scores = part3 + bias_ref[...].astype(jnp.float32)              # [Gt, Rt]

    # Online (flash-style) softmax over the roads axis.  Keep the subtraction
    # and exp in f32 so exp(-1e30 - m) underflows to exactly 0.
    m_prev = m_ref[...]                                             # [Gt, 1]
    m_new = jnp.maximum(m_prev, jnp.max(scores, axis=-1, keepdims=True))
    alpha = jnp.exp(m_prev - m_new)                                 # [Gt, 1]
    p = jnp.exp(scores - m_new)                                     # [Gt, Rt]
    l_ref[...] = alpha * l_ref[...] + jnp.sum(p, axis=-1, keepdims=True)
    acc_ref[...] = alpha * acc_ref[...] + jnp.dot(
        p.astype(compute_dtype), v_ref[...],
        preferred_element_type=jnp.float32)                         # [Gt, Hp]
    m_ref[...] = m_new

    @pl.when(r == pl.num_programs(1) - 1)
    def _finalize():
        summ = summ_ref[...]                                        # [Gt, Hp]
        # A region with at least one assigned road always has a max score far
        # above -1e29 (part1+part2+part3 are O(1)); rows that never left the
        # -1e30 fill correspond to the `len(road_in_region) == 0` branch and
        # keep the raw region summary (this also neutralises G/R padding).
        has_roads = m_ref[...] > _NEG_THRESH                        # [Gt, 1]
        inv_l = 1.0 / l_ref[...]                                    # [Gt, 1]
        out = jnp.where(has_roads, acc_ref[...] * inv_l + summ, summ)
        out_ref[...] = out.astype(out_ref.dtype)


def _round_up(x, m):
    return (x + m - 1) // m * m


def road2region_atten(road_emb, assign_matrix, region_fea, dist_matrix,
                      degree_matrix, wq, wk, wv, wp, w1, w2,
                      len_table, deg_table, hidden_channels,
                      *, compute_dtype=jnp.bfloat16, g_tile=256, r_tile=512):
    """Forward pass of Road2RegionAtten. Returns [num_regions, hidden]."""
    road_emb = jnp.asarray(road_emb, jnp.float32)
    region_fea = jnp.asarray(region_fea, jnp.float32)
    wq = jnp.asarray(wq, jnp.float32)
    wk = jnp.asarray(wk, jnp.float32)
    wv = jnp.asarray(wv, jnp.float32)
    wp = jnp.asarray(wp, jnp.float32)
    w1 = jnp.asarray(w1, jnp.float32)
    w2 = jnp.asarray(w2, jnp.float32)
    len_table = jnp.asarray(len_table, jnp.float32)
    deg_table = jnp.asarray(deg_table, jnp.float32)
    assign_matrix = jnp.asarray(assign_matrix, jnp.int32)
    dist_matrix = jnp.asarray(dist_matrix, jnp.int32)
    degree_matrix = jnp.asarray(degree_matrix, jnp.int32)

    R, H = road_emb.shape
    G = region_fea.shape[0]
    inv_sqrt_d = float(1.0 / np.sqrt(hidden_channels))
    cdt = np.dtype(compute_dtype)
    bias_dtype = jnp.bfloat16 if cdt == np.dtype(jnp.bfloat16) else jnp.float32

    # ---- tile / padding geometry -------------------------------------------
    H_pad = max(_round_up(H, 128), 128)   # lane dim of v' / residual / output
    Hk = max(_round_up(H, 16), 16)        # contraction dim (sublanes of k^T)
    R_pad = max(_round_up(R, 128), 128)
    Rt = min(max(_round_up(r_tile, 128), 128), R_pad)
    R_pad = _round_up(R_pad, Rt)
    if G <= g_tile:
        # Small G: aim for >=2 region steps so megacore (v7x) has work to shard.
        Gt = max(8, min(_round_up((G + 1) // 2, 8), _round_up(G, 8)))
    else:
        Gt = _round_up(g_tile, 8)
    G_pad = _round_up(G, Gt)

    # ---- wrapper glue (plain XLA) -------------------------------------------
    # Collapse the embedding tables into one [G, R] additive score bias with
    # the assignment mask and 1/sqrt(d) folded in.
    s_deg = jnp.dot(w1, deg_table.T) * inv_sqrt_d                   # [G, 360]
    s_len = jnp.dot(w2, len_table.T) * inv_sqrt_d                   # [G, 200]
    part1 = jnp.take_along_axis(s_deg, degree_matrix.T, axis=1)     # [G, R]
    part2 = jnp.take_along_axis(s_len, dist_matrix.T, axis=1)       # [G, R]
    mask = assign_matrix.T == 1                                     # [G, R]
    bias = jnp.where(mask, part1 + part2, _NEG)                     # [G, R]
    bias_pad = jnp.full((G_pad, R_pad), _NEG, jnp.float32)
    bias_pad = bias_pad.at[:G, :R].set(bias).astype(bias_dtype)

    # Residual / raw region summaries (kept f32).
    summ_pad = jnp.zeros((G_pad, H_pad), jnp.float32).at[:G, :H].set(region_fea)

    # Per-region query, projected once, 1/sqrt(d) folded in (f32 -> one cast).
    q = jnp.dot(region_fea, wq.T) * inv_sqrt_d                      # [G, H]
    q_pad = jnp.zeros((G_pad, Hk), jnp.float32).at[:G, :H].set(q)
    q_pad = q_pad.astype(compute_dtype)

    # Keys, projected once and stored transposed [Hk, R_pad]: roads on lanes,
    # hidden on sublanes (no 128-padding waste on the contraction dim).
    k = jnp.dot(road_emb, wk.T)                                     # [R, H]
    kt_pad = jnp.zeros((Hk, R_pad), jnp.float32).at[:H, :R].set(k.T)
    kt_pad = kt_pad.astype(compute_dtype)

    # Values with the output projection folded in:
    #   (probs @ (road @ wv^T)) @ wp^T == probs @ (road @ (wp @ wv)^T)
    wpv = jnp.dot(wp, wv)                                           # [H, H] f32
    v = jnp.dot(road_emb, wpv.T)                                    # [R, H]
    v_pad = jnp.zeros((R_pad, H_pad), jnp.float32).at[:R, :H].set(v)
    v_pad = v_pad.astype(compute_dtype)

    # ---- VMEM budget (double-buffered tiles + scratch) -----------------------
    cb = cdt.itemsize
    bb = np.dtype(bias_dtype).itemsize
    tile_bytes = 2 * (Gt * H_pad * 4            # region summaries (f32)
                      + Gt * Hk * cb            # q
                      + Hk * Rt * cb            # k^T
                      + Rt * H_pad * cb         # v'
                      + Gt * Rt * bb            # bias
                      + Gt * H_pad * 4)         # output (f32)
    scratch_bytes = Gt * H_pad * 4 + 2 * Gt * 128 * 4
    vmem_limit = int(min(max(1.25 * (tile_bytes + scratch_bytes) + (2 << 20),
                             32 << 20), 96 << 20))

    kernel = functools.partial(_road2region_kernel, compute_dtype=compute_dtype)
    out = pl.pallas_call(
        kernel,
        out_shape=jax.ShapeDtypeStruct((G_pad, H_pad), jnp.float32),
        grid=(G_pad // Gt, R_pad // Rt),
        in_specs=[
            pl.BlockSpec((Gt, H_pad), lambda g, r: (g, 0)),   # region summaries
            pl.BlockSpec((Gt, Hk), lambda g, r: (g, 0)),      # q (scaled)
            pl.BlockSpec((Hk, Rt), lambda g, r: (0, r)),      # k^T
            pl.BlockSpec((Rt, H_pad), lambda g, r: (r, 0)),   # v' (proj folded)
            pl.BlockSpec((Gt, Rt), lambda g, r: (g, r)),      # score bias + mask
        ],
        out_specs=pl.BlockSpec((Gt, H_pad), lambda g, r: (g, 0)),
        scratch_shapes=[
            pltpu.VMEM((Gt, 1), jnp.float32),       # running max m
            pltpu.VMEM((Gt, 1), jnp.float32),       # running denom l
            pltpu.VMEM((Gt, H_pad), jnp.float32),   # running numerator acc
        ],
        compiler_params=pltpu.CompilerParams(
            dimension_semantics=("parallel", "arbitrary"),
            vmem_limit_bytes=vmem_limit),
    )(summ_pad, q_pad, kt_pad, v_pad, bias_pad)
    return out[:G, :H]


def _reference_numpy(road_emb, assign, region_fea, dist_mat, degree_mat,
                     wq, wk, wv, wp, w1, w2, len_table, deg_table, hidden):
    G = region_fea.shape[0]
    out = []
    for g in range(G):
        summ = region_fea[g:g + 1]                           # [1, H]
        roads = np.nonzero(assign[:, g] == 1)[0]
        if len(roads) == 0:
            out.append(summ)
            continue
        deg_e = deg_table[degree_mat[roads, g]]              # [n, E]
        len_e = len_table[dist_mat[roads, g]]                # [n, E]
        part1 = deg_e @ w1[g]                                # [n]
        part2 = len_e @ w2[g]                                # [n]
        q = summ @ wq.T                                      # [1, H]
        k = road_emb[roads] @ wk.T                           # [n, H]
        v = road_emb[roads] @ wv.T                           # [n, H]
        part3 = (q @ k.T)[0]                                 # [n]
        scores = (part1 + part2 + part3) / np.sqrt(hidden)
        scores = scores - scores.max()
        p = np.exp(scores)
        p = p / p.sum()
        att = p @ v                                          # [H]
        out.append((att @ wp.T + summ[0])[None])
    return np.concatenate(out, axis=0)


if __name__ == "__main__":
    R, G, H, E = 24, 8, 32, 16  # num_roads, num_regions, hidden_channels, emb_dim

    key = jax.random.PRNGKey(0)
    keys = jax.random.split(key, 12)

    bound = 1.0 / np.sqrt(H)
    wq = jax.random.uniform(keys[0], (H, H), jnp.float32, -bound, bound)
    wk = jax.random.uniform(keys[1], (H, H), jnp.float32, -bound, bound)
    wv = jax.random.uniform(keys[2], (H, H), jnp.float32, -bound, bound)
    wp = jax.random.uniform(keys[3], (H, H), jnp.float32, -bound, bound)
    len_table = jax.random.normal(keys[4], (200, E), jnp.float32)
    len_table = len_table.at[0].set(0.0)                      # padding_idx=0
    deg_table = jax.random.normal(keys[5], (360, E), jnp.float32)
    w1 = 0.1 * jax.random.normal(keys[6], (G, E), jnp.float32)
    w2 = 0.1 * jax.random.normal(keys[7], (G, E), jnp.float32)

    road_emb = jax.random.normal(keys[8], (R, H), jnp.float32)
    region_fea = jax.random.normal(keys[9], (G, H), jnp.float32)
    assign = (jax.random.uniform(keys[10], (R, G)) < 0.4).astype(jnp.int32)
    assign = assign.at[:, G - 1].set(0)                       # force one empty region
    ikeys = jax.random.split(keys[11], 2)
    dist_mat = jax.random.randint(ikeys[0], (R, G), 0, 200, jnp.int32)
    degree_mat = jax.random.randint(ikeys[1], (R, G), 0, 360, jnp.int32)

    ref = _reference_numpy(np.asarray(road_emb), np.asarray(assign),
                           np.asarray(region_fea), np.asarray(dist_mat),
                           np.asarray(degree_mat), np.asarray(wq), np.asarray(wk),
                           np.asarray(wv), np.asarray(wp), np.asarray(w1),
                           np.asarray(w2), np.asarray(len_table),
                           np.asarray(deg_table), H)

    # f32 compute path (tight check).
    out_f32 = road2region_atten(road_emb, assign, region_fea, dist_mat, degree_mat,
                                wq, wk, wv, wp, w1, w2, len_table, deg_table, H,
                                compute_dtype=jnp.float32)
    out_f32 = jax.block_until_ready(out_f32)
    np.testing.assert_allclose(np.asarray(out_f32), ref, rtol=1e-4, atol=1e-4)

    # bf16 MXU path (default; recommended on v6e/v7x), f32 accumulation.
    out_bf16 = road2region_atten(road_emb, assign, region_fea, dist_mat, degree_mat,
                                 wq, wk, wv, wp, w1, w2, len_table, deg_table, H)
    out_bf16 = jax.block_until_ready(out_bf16)
    np.testing.assert_allclose(np.asarray(out_bf16), ref, rtol=5e-2, atol=5e-2)

    print("KERNEL_OK")
</pallas_src>

<mosaic_0001>
module attributes {stable_mosaic.version = 11 : i64} {
  func.func @_road2region_kernel(%arg0: i32, %arg1: i32, %arg2: memref<8x128xf32, #tpu.memory_space<vmem>>, %arg3: memref<8x32xf32, #tpu.memory_space<vmem>>, %arg4: memref<32x128xf32, #tpu.memory_space<vmem>>, %arg5: memref<128x128xf32, #tpu.memory_space<vmem>>, %arg6: memref<8x128xf32, #tpu.memory_space<vmem>>, %arg7: memref<8x128xf32, #tpu.memory_space<vmem>>, %arg8: memref<8x1xf32, #tpu.memory_space<vmem>>, %arg9: memref<8x1xf32, #tpu.memory_space<vmem>>, %arg10: memref<8x128xf32, #tpu.memory_space<vmem>>) attributes {dimension_semantics = [#tpu.dimension_semantics<parallel>, #tpu.dimension_semantics<arbitrary>], iteration_bounds = array<i64: 1, 1>, scalar_prefetch = 0 : i64, scratch_operands = 3 : i64, tpu.core_type = #tpu.core_type<tc>, window_params = [{transform_indices = @transform_0, window_bounds = array<i64: 8, 128>}, {transform_indices = @transform_1, window_bounds = array<i64: 8, 32>}, {transform_indices = @transform_2, window_bounds = array<i64: 32, 128>}, {transform_indices = @transform_3, window_bounds = array<i64: 128, 128>}, {transform_indices = @transform_4, window_bounds = array<i64: 8, 128>}, {transform_indices = @transform_5, window_bounds = array<i64: 8, 128>}]} {
    %c0_i32 = arith.constant 0 : i32
    %0 = arith.cmpi eq, %arg1, %c0_i32 : i32
    %1 = arith.extui %0 : i1 to i32
    %c0_i32_0 = arith.constant 0 : i32
    %2 = arith.cmpi ne, %1, %c0_i32_0 : i32
    scf.if %2 {
      %cst_25 = arith.constant 0xFF800000 : f32
      %34 = vector.broadcast %cst_25 : f32 to vector<8x1xf32>
      %c0_26 = arith.constant 0 : index
      %c0_27 = arith.constant 0 : index
      %35 = vector.load %arg8[%c0_26, %c0_27] : memref<8x1xf32, #tpu.memory_space<vmem>>, vector<8x1xf32>
      tpu.vector_store %arg8[%c0_26, %c0_27], %34 {strides = array<i32>} : memref<8x1xf32, #tpu.memory_space<vmem>>, vector<8x1xf32>,
      %cst_28 = arith.constant 0.000000e+00 : f32
      %36 = vector.broadcast %cst_28 : f32 to vector<8x1xf32>
      %c0_29 = arith.constant 0 : index
      %c0_30 = arith.constant 0 : index
      %37 = vector.load %arg9[%c0_29, %c0_30] : memref<8x1xf32, #tpu.memory_space<vmem>>, vector<8x1xf32>
      tpu.vector_store %arg9[%c0_29, %c0_30], %36 {strides = array<i32>} : memref<8x1xf32, #tpu.memory_space<vmem>>, vector<8x1xf32>,
      %cst_31 = arith.constant 0.000000e+00 : f32
      %38 = vector.broadcast %cst_31 : f32 to vector<8x128xf32>
      %c0_32 = arith.constant 0 : index
      %c0_33 = arith.constant 0 : index
      %39 = vector.load %arg10[%c0_32, %c0_33] : memref<8x128xf32, #tpu.memory_space<vmem>>, vector<8x128xf32>
      tpu.vector_store %arg10[%c0_32, %c0_33], %38 {strides = array<i32>} : memref<8x128xf32, #tpu.memory_space<vmem>>, vector<8x128xf32>,
    } else {
    }
    %c0 = arith.constant 0 : index
    %c0_1 = arith.constant 0 : index
    %3 = vector.load %arg3[%c0, %c0_1] : memref<8x32xf32, #tpu.memory_space<vmem>>, vector<8x32xf32>
    %c0_2 = arith.constant 0 : index
    %c0_3 = arith.constant 0 : index
    %4 = vector.load %arg4[%c0_2, %c0_3] : memref<32x128xf32, #tpu.memory_space<vmem>>, vector<32x128xf32>
    %cst = arith.constant dense<0.000000e+00> : vector<8x128xf32>
    %5 = tpu.matmul %3, %4, %cst {dimension_numbers = #tpu.dot_dimension_numbers<[1], [0], [0], [1], [0, 0, 1, 1], [], []>} : vector<8x32xf32>, vector<32x128xf32>, vector<8x128xf32> -> vector<8x128xf32>
    %c0_4 = arith.constant 0 : index
    %c0_5 = arith.constant 0 : index
    %6 = vector.load %arg6[%c0_4, %c0_5] : memref<8x128xf32, #tpu.memory_space<vmem>>, vector<8x128xf32>
    %7 = arith.addf %5, %6 : vector<8x128xf32>
    %c0_6 = arith.constant 0 : index
    %c0_7 = arith.constant 0 : index
    %8 = vector.load %arg8[%c0_6, %c0_7] : memref<8x1xf32, #tpu.memory_space<vmem>>, vector<8x1xf32>
    %cst_8 = arith.constant dense<0xFF800000> : vector<8xf32>
    %9 = vector.multi_reduction <maximumf>, %7, %cst_8 [1] : vector<8x128xf32> to vector<8xf32>
    %10 = vector.shape_cast %9 : vector<8xf32> to vector<8x1xf32>
    %11 = arith.maximumf %8, %10 : vector<8x1xf32>
    %12 = arith.subf %8, %11 : vector<8x1xf32>
    %13 = math.exp %12 : vector<8x1xf32>
    %14 = vector.broadcast %11 : vector<8x1xf32> to vector<8x128xf32>
    %15 = arith.subf %7, %14 : vector<8x128xf32>
    %16 = math.exp %15 : vector<8x128xf32>
    %c0_9 = arith.constant 0 : index
    %c0_10 = arith.constant 0 : index
    %17 = vector.load %arg9[%c0_9, %c0_10] : memref<8x1xf32, #tpu.memory_space<vmem>>, vector<8x1xf32>
    %18 = arith.mulf %13, %17 : vector<8x1xf32>
    %cst_11 = arith.constant dense<0.000000e+00> : vector<8xf32>
    %19 = vector.multi_reduction <add>, %16, %cst_11 [1] : vector<8x128xf32> to vector<8xf32>
    %20 = vector.shape_cast %19 : vector<8xf32> to vector<8x1xf32>
    %21 = arith.addf %18, %20 : vector<8x1xf32>
    %c0_12 = arith.constant 0 : index
    %c0_13 = arith.constant 0 : index
    %22 = vector.load %arg9[%c0_12, %c0_13] : memref<8x1xf32, #tpu.memory_space<vmem>>, vector<8x1xf32>
    tpu.vector_store %arg9[%c0_12, %c0_13], %21 {strides = array<i32>} : memref<8x1xf32, #tpu.memory_space<vmem>>, vector<8x1xf32>,
    %c0_14 = arith.constant 0 : index
    %c0_15 = arith.constant 0 : index
    %23 = vector.load %arg10[%c0_14, %c0_15] : memref<8x128xf32, #tpu.memory_space<vmem>>, vector<8x128xf32>
    %24 = vector.broadcast %13 : vector<8x1xf32> to vector<8x128xf32>
    %25 = arith.mulf %24, %23 : vector<8x128xf32>
    %c0_16 = arith.constant 0 : index
    %c0_17 = arith.constant 0 : index
    %26 = vector.load %arg5[%c0_16, %c0_17] : memref<128x128xf32, #tpu.memory_space<vmem>>, vector<128x128xf32>
    %cst_18 = arith.constant dense<0.000000e+00> : vector<8x128xf32>
    %27 = tpu.matmul %16, %26, %cst_18 {dimension_numbers = #tpu.dot_dimension_numbers<[1], [0], [0], [1], [0, 0, 1, 1], [], []>} : vector<8x128xf32>, vector<128x128xf32>, vector<8x128xf32> -> vector<8x128xf32>
    %28 = arith.addf %25, %27 : vector<8x128xf32>
    %c0_19 = arith.constant 0 : index
    %c0_20 = arith.constant 0 : index
    %29 = vector.load %arg10[%c0_19, %c0_20] : memref<8x128xf32, #tpu.memory_space<vmem>>, vector<8x128xf32>
    tpu.vector_store %arg10[%c0_19, %c0_20], %28 {strides = array<i32>} : memref<8x128xf32, #tpu.memory_space<vmem>>, vector<8x128xf32>,
    %c0_21 = arith.constant 0 : index
    %c0_22 = arith.constant 0 : index
    %30 = vector.load %arg8[%c0_21, %c0_22] : memref<8x1xf32, #tpu.memory_space<vmem>>, vector<8x1xf32>
    tpu.vector_store %arg8[%c0_21, %c0_22], %11 {strides = array<i32>} : memref<8x1xf32, #tpu.memory_space<vmem>>, vector<8x1xf32>,
    %c0_i32_23 = arith.constant 0 : i32
    %31 = arith.cmpi eq, %arg1, %c0_i32_23 : i32
    %32 = arith.extui %31 : i1 to i32
    %c0_i32_24 = arith.constant 0 : i32
    %33 = arith.cmpi ne, %32, %c0_i32_24 : i32
    scf.if %33 {
      %c0_25 = arith.constant 0 : index
      %c0_26 = arith.constant 0 : index
      %34 = vector.load %arg2[%c0_25, %c0_26] : memref<8x128xf32, #tpu.memory_space<vmem>>, vector<8x128xf32>
      %c0_27 = arith.constant 0 : index
      %c0_28 = arith.constant 0 : index
      %35 = vector.load %arg8[%c0_27, %c0_28] : memref<8x1xf32, #tpu.memory_space<vmem>>, vector<8x1xf32>
      %cst_29 = arith.constant -1.000000e+29 : f32
      %36 = vector.broadcast %cst_29 : f32 to vector<8x1xf32>
      %37 = arith.cmpf ogt, %35, %36 : vector<8x1xf32>
      %c0_30 = arith.constant 0 : index
      %c0_31 = arith.constant 0 : index
      %38 = vector.load %arg9[%c0_30, %c0_31] : memref<8x1xf32, #tpu.memory_space<vmem>>, vector<8x1xf32>
      %cst_32 = arith.constant 1.000000e+00 : f32
      %39 = vector.broadcast %cst_32 : f32 to vector<8x1xf32>
      %40 = arith.divf %39, %38 : vector<8x1xf32>
      %c0_33 = arith.constant 0 : index
      %c0_34 = arith.constant 0 : index
      %41 = vector.load %arg10[%c0_33, %c0_34] : memref<8x128xf32, #tpu.memory_space<vmem>>, vector<8x128xf32>
      %42 = vector.broadcast %40 : vector<8x1xf32> to vector<8x128xf32>
      %43 = arith.mulf %41, %42 : vector<8x128xf32>
      %44 = arith.addf %43, %34 : vector<8x128xf32>
      %45 = vector.shape_cast %37 : vector<8x1xi1> to vector<8x1xi1>
      %46 = vector.broadcast %45 : vector<8x1xi1> to vector<8x128xi1>
      %47 = arith.select %46, %44, %34 : vector<8x128xi1>, vector<8x128xf32>
      %c0_35 = arith.constant 0 : index
      %c0_36 = arith.constant 0 : index
      %48 = vector.load %arg7[%c0_35, %c0_36] : memref<8x128xf32, #tpu.memory_space<vmem>>, vector<8x128xf32>
      tpu.vector_store %arg7[%c0_35, %c0_36], %47 {strides = array<i32>} : memref<8x128xf32, #tpu.memory_space<vmem>>, vector<8x128xf32>,
    } else {
    }
    return
  }
  func.func @transform_0(%arg0: i32, %arg1: i32) -> (i32, i32) {
    %c0_i32 = arith.constant 0 : i32
    %c0_i32_0 = arith.constant 0 : i32
    return %arg0, %c0_i32 : i32, i32
  }
  func.func @transform_1(%arg0: i32, %arg1: i32) -> (i32, i32) {
    %c0_i32 = arith.constant 0 : i32
    %c0_i32_0 = arith.constant 0 : i32
    return %arg0, %c0_i32 : i32, i32
  }
  func.func @transform_2(%arg0: i32, %arg1: i32) -> (i32, i32) {
    %c0_i32 = arith.constant 0 : i32
    %c0_i32_0 = arith.constant 0 : i32
    return %c0_i32, %arg1 : i32, i32
  }
  func.func @transform_3(%arg0: i32, %arg1: i32) -> (i32, i32) {
    %c0_i32 = arith.constant 0 : i32
    %c0_i32_0 = arith.constant 0 : i32
    return %arg1, %c0_i32 : i32, i32
  }
  func.func @transform_4(%arg0: i32, %arg1: i32) -> (i32, i32) {
    %c0_i32 = arith.constant 0 : i32
    return %arg0, %arg1 : i32, i32
  }
  func.func @transform_5(%arg0: i32, %arg1: i32) -> (i32, i32) {
    %c0_i32 = arith.constant 0 : i32
    %c0_i32_0 = arith.constant 0 : i32
    return %arg0, %c0_i32 : i32, i32
  }
}

</mosaic_0001>

<bundles_post_ra>
// kernel: tpu_custom_call.1
= control target key start
LH: loop header
LB: loop body
LE: loop exit
PB: predicated region body
PF: predicated region fallthrough
CT: control target
= control target key end

     0   :  { %10 = vsyncpa [#allocation6], 0  ;;  %s495_s0 = inlined_call_operand.hbm [shape: f32[8,128], index: 0, kind: input, shape index: {}]   ;;  %s496_s1 = inlined_call_operand.hbm [shape: f32[8,32], index: 1, kind: input, shape index: {}]   ;;  %s497_s2 = inlined_call_operand.hbm [shape: f32[32,128], index: 2, kind: input, shape index: {}]   ;;  %s498_s3 = inlined_call_operand.hbm [shape: f32[128,128], index: 3, kind: input, shape index: {}]   ;;  %s499_s4 = inlined_call_operand.hbm [shape: f32[8,128], index: 4, kind: input, shape index: {}]   ;;  %s500_s5 = inlined_call_operand.hbm [shape: f32[8,128], index: 5, kind: output, shape index: {}]  }
   0x1   :  { %11 = vsyncpa [#allocation9], 0 }
   0x2   :  { %12 = vsyncpa [#allocation12], 0  ;;  %s30_s20 = sshll.u32 %s496_s1, 4  ;;  %s31_s20 = int_to_ptr.hbm [resolvable:$true] %s30_s20 }
   0x3   :  { %13 = vsyncpa [#allocation7], 0  ;;  %s428_s21 = smov [#allocation8]   ;;  %s53_s25 = sshll.u32 %s498_s3, 4  ;;  %s54_s25 = int_to_ptr.hbm [resolvable:$true] %s53_s25 }
   0x4   :  { %s32_s22 = sshll.u32 %s428_s21, 4  ;;  %s429_s26 = smov [#allocation11]   ;;  %s33_s22 = int_to_ptr.vmem [resolvable:$true] %s32_s22 }
   0x5   :  { %35 = dma.hbm_to_vmem [thread:$0]  %s31_s20, 128, %s33_s22, [#allocation9]  }
   0x6   :  { %s55_s27 = sshll.u32 %s429_s26, 4  ;;  %s19_s30 = sshll.u32 %s495_s0, 4  ;;  %s56_s27 = int_to_ptr.vmem [resolvable:$true] %s55_s27  ;;  %s20_s30 = int_to_ptr.hbm [resolvable:$true] %s19_s30 }
   0x7   :  { %s430_s1 = smov 128   ;;  %s431_s6 = smov 8  }
   0x8   :  { %61 = dma.hbm_to_vmem [thread:$0]  %s54_s25, 2048, %s56_s27, [#allocation12], %s430_s1, %s430_s1, %s431_s6  }
   0x9   :  { %s40_s9 = sshll.u32 %s497_s2, 4  ;;  %s432_s10 = smov [#allocation5]   ;;  %s41_s9 = int_to_ptr.hbm [resolvable:$true] %s40_s9 }
   0xa   :  { %s21_s11 = sshll.u32 %s432_s10, 4  ;;  %s433_s3 = smov [#allocation10]   ;;  %s22_s11 = int_to_ptr.vmem [resolvable:$true] %s21_s11 }
   0xb   :  { %24 = dma.hbm_to_vmem [thread:$0]  %s20_s30, 128, %s22_s11, [#allocation6]  }
   0xc   :  { %s42_s12 = sshll.u32 %s433_s3, 4  ;;  %s67_s0 = sshll.u32 %s499_s4, 4  ;;  %s43_s12 = int_to_ptr.vmem [resolvable:$true] %s42_s12  ;;  %s68_s0 = int_to_ptr.hbm [resolvable:$true] %s67_s0 }
   0xd   :  { %48 = dma.hbm_to_vmem [thread:$0]  %s41_s9, 512, %s43_s12, [#allocation9], %s430_s1, %s430_s1, %s431_s6  }
   0xe   :  { %s434_s15 = smov [#allocation13]  }
   0xf   :  { %s69_s16 = sshll.u32 %s434_s15, 4  ;;  %s70_s16 = int_to_ptr.vmem [resolvable:$true] %s69_s16 }
  0x10   :  { %72 = dma.hbm_to_vmem [thread:$0]  %s68_s0, 128, %s70_s16, [#allocation12]  }
  0x11   :  { %420 = dma.done.wait [#allocation6], 128  }
  0x12   :  { %421 = vsyncadd [#allocation6], 4294967168 }
  0x13   :  { %422 = dma.done.wait [#allocation9], 640  }
  0x14   :  { %423 = vsyncadd [#allocation9], 4294966656 }
  0x15   :  { %424 = dma.done.wait [#allocation12], 2176  }
  0x16   :  { %425 = vsyncadd [#allocation12], 4294965120  ;;  %v105_v0 = vld [vmem:[#allocation10 + $0x18] sm:$0xff]  ;;  %v104_v1 = vld [vmem:[#allocation10 + $0x10] sm:$0xff]  ;;  %vm107_vm0 = vcmask 261120   ;;  %vm97_vm1 = vcmask 7168  }
  0x17   :  { %123 = vmatpush.msra.mxu0 %v105_v0  ;;  %v103_v2 = vld [vmem:[#allocation10 + $0x8] sm:$0xff]  ;;  %v102_v3 = vld [vmem:[#allocation10] sm:$0xff]  ;;  %v101_v4 = vld [vmem:[#allocation8] sm:$0xff]  ;;  %v435_v5 = vmov -inf   ;;  %v436_v9 = vmov 0   ;;  %v437_v10 = vmov 0.0  }
  0x18   :  { %98 = vst.msk [vmem:[#allocation2] sm:$0xff] %vm97_vm1, %v435_v5  ;;  %v106_v6 = vld [vmem:[#allocation13] sm:$0xff]  ;;  %267 = vset.pattern.permute.xlu0 %v436_v9  ;;  %268 = vset.pattern.permute.xlu1 %v436_v9  ;;  %v175_v11 = vld [vmem:[#allocation11 + $0x78] sm:$0xff]  ;;  %v174_v12 = vld [vmem:[#allocation11 + $0x70] sm:$0xff]  ;;  %s438_s2 = smov [#allocation14]   ;;  %s243_s19 = sshll.u32 %s500_s5, 4  ;;  %s244_s19 = int_to_ptr.hbm [resolvable:$true] %s243_s19 }
  0x19   :  { %124 = vmatpush.msra.mxu0 %v104_v1  ;;  %269 = vset.pattern.permute.xlu2 %v436_v9  ;;  %99 = vst.msk [vmem:[#allocation3] sm:$0xff] %vm97_vm1, %v437_v10  ;;  %v173_v13 = vld [vmem:[#allocation11 + $0x68] sm:$0xff]  ;;  %v172_v14 = vld [vmem:[#allocation11 + $0x60] sm:$0xff]  ;;  %v171_v15 = vld [vmem:[#allocation11 + $0x58] sm:$0xff]  ;;  %s241_s4 = sshll.u32 %s438_s2, 4  ;;  %s242_s4 = int_to_ptr.vmem [resolvable:$true] %s241_s4 }
  0x1a   :  { %176 = vmatpush.msra.mxu1 %v175_v11  ;;  %v170_v16 = vld [vmem:[#allocation11 + $0x50] sm:$0xff]  ;;  %v169_v17 = vld [vmem:[#allocation11 + $0x48] sm:$0xff]  ;;  %v168_v18 = vld [vmem:[#allocation11 + $0x40] sm:$0xff] }
  0x1b   :  { %125 = vmatpush.msra.mxu0 %v103_v2  ;;  %v167_v19 = vld [vmem:[#allocation11 + $0x38] sm:$0xff]  ;;  %v166_v20 = vld [vmem:[#allocation11 + $0x30] sm:$0xff]  ;;  %v165_v25 = vld [vmem:[#allocation11 + $0x28] sm:$0xff] }
  0x1c   :  { %177 = vmatpush.msra.mxu1 %v174_v12  ;;  %v164_v26 = vld [vmem:[#allocation11 + $0x20] sm:$0xff]  ;;  %v163_v27 = vld [vmem:[#allocation11 + $0x18] sm:$0xff]  ;;  %v162_v28 = vld [vmem:[#allocation11 + $0x10] sm:$0xff] }
  0x1d   :  { %126 = vmatpush.msra.mxu0 %v102_v3  ;;  %v161_v29 = vld [vmem:[#allocation11 + $0x8] sm:$0xff]  ;;  %v160_v30 = vld [vmem:[#allocation11] sm:$0xff]  ;;  %v202_v60 = vld [vmem:[#allocation5] sm:$0xff] }
  0x1e   :  { %255 = vmatmul.msk.f32.vlgmr.msra.gmra.mxu0 %vm107_vm0, %v101_v4  ;;  %178 = vmatpush.msra.mxu1 %v173_v13 }
  0x1f   :  { %v131_v21 = vld [vmem:[#allocation2] sm:$0xff] }
  0x20   :  { %179 = vmatpush.msra.mxu1 %v172_v14  ;;  %v146_v37 = vld [vmem:[#allocation3] sm:$0xff] }
  0x22   :  { %180 = vmatpush.msra.mxu1 %v171_v15 }
  0x24   :  { %181 = vmatpush.msra.mxu1 %v170_v16 }
  0x26   :  { %182 = vmatpush.msra.mxu1 %v169_v17 }
  0x28   :  { %183 = vmatpush.msra.mxu1 %v168_v18 }
  0x2a   :  { %184 = vmatpush.msra.mxu1 %v167_v19 }
  0x2c   :  { %185 = vmatpush.msra.mxu1 %v166_v20 }
  0x2e   :  { %186 = vmatpush.msra.mxu1 %v165_v25 }
  0x30   :  { %187 = vmatpush.msra.mxu1 %v164_v26 }
  0x32   :  { %188 = vmatpush.msra.mxu1 %v163_v27 }
  0x34   :  { %189 = vmatpush.msra.mxu1 %v162_v28 }
  0x36   :  { %190 = vmatpush.msra.mxu1 %v161_v29 }
  0x38   :  { %191 = vmatpush.msra.mxu1 %v160_v30 }
  0x9b   :  { %v128_v7 = vpop.f32.mrf.mxu0 }
  0x9c   :  { %v129_v8 = vadd.f32 %v128_v7, %v106_v6 }
  0x9e   :  { %132 = vmax.xlane.f32.xlu0 %v129_v8 }
 0x111   :  { %v133_v22 = vpop.xlane.xlu0 %132 }
 0x112   :  { %v134_v23 = vmax.f32 %v131_v21, %v133_v22 }
 0x114   :  { %v135_v24 = vsub.f32 %v131_v21, %v134_v23  ;;  %198 = vst.msk [vmem:[#allocation2] sm:$0xff] %vm97_vm1, %v134_v23  ;;  %140 = vperm.xlu0 %267, %v134_v23  }
 0x116   :  { %v136_v35 = vmul.f32 1.442695, %v135_v24 }
 0x11b   :  { %v203_v52 = vld [vmem:[#allocation2] sm:$0xff] }
 0x11c   :  { %vm204_vm6 = vcmp.gt.f32.partialorder %v203_v52, -1e+29 }
 0x11d   :  { %v229_v53 = vsel %vm204_vm6, 1, %v436_v9 }
 0x186   :  { %v141_v31 = vpop.permute.xlu0 %140 }
 0x187   :  { %v143_v32 = vsub.f32 %v129_v8, %v141_v31 }
 0x189   :  { %v144_v33 = vmul.f32 1.442695, %v143_v32 }
 0x18b   :  { %270 = vpow2.f32 %v144_v33 }
 0x18c   :  { %272 = vpow2.f32 %v136_v35 }
 0x191   :  { %v271_v34 = vpop.eup %270 }
 0x192   :  { %148 = vadd.xlane.f32.xlu1 %v271_v34  ;;  %192 = vmatmul.f32.vlgmr.msra.gmra.mxu1 %v271_v34  ;;  %v273_v36 = vpop.eup %272 }
 0x193   :  { %v147_v38 = vmul.f32 %v273_v36, %v146_v37 }
 0x1ab   :  { %156 = vperm.xlu1 %268, %v273_v36  }
 0x205   :  { %v149_v39 = vpop.xlane.xlu1 %148 }
 0x206   :  { %v150_v40 = vadd.f32 %v149_v39, %v147_v38 }
 0x208   :  { %152 = vst.msk [vmem:[#allocation3] sm:$0xff] %vm97_vm1, %v150_v40 }
 0x20f   :  { %v205_v41 = vld [vmem:[#allocation3] sm:$0xff]  ;;  %v193_v57 = vpop.f32.mrf.mxu1 }
 0x210   :  { %274 = vrcp.f32 %v205_v41  ;;  %v217_v45 = vand.u32 2147483648, %v205_v41  ;;  %v215_v47 = vand.u32 2147483647, %v205_v41  ;;  %vm211_vm3 = vweird.f32 %v205_v41 }
 0x212   :  { %v218_v49 = vor.u32 1.1754944e-38, %v217_v45  ;;  %vm216_vm5 = vcmp.eq.f32.partialorder %v215_v47, 8.507059e+37 }
 0x216   :  { %v275_v42 = vpop.eup %274 }
 0x217   :  { %v207_v43 = vmul.f32 %v275_v42, %v205_v41  ;;  %vm212_vm2 = vweird.f32 %v275_v42 }
 0x218   :  { %vm213_vm4 = vmor %vm211_vm3, %vm212_vm2 }
 0x219   :  { %v208_v44 = vsub.f32 1.0, %v207_v43 }
 0x21b   :  { %v209_v46 = vmul.f32 %v275_v42, %v208_v44 }
 0x21d   :  { %v210_v48 = vadd.f32 %v275_v42, %v209_v46  ;;  %v157_v54 = vpop.permute.xlu1 %156 }
 0x21e   :  { %v159_v55 = vmul.f32 0.0, %v157_v54 }
 0x21f   :  { %v214_v50 = vsel %vm213_vm4, %v275_v42, %v210_v48 }
 0x220   :  { %v219_v51 = vsel %vm216_vm5, %v218_v49, %v214_v50  ;;  %v196_v58 = vadd.f32 %v193_v57, %v159_v55 }
 0x221   :  { %224 = vperm.xlu2 %269, %v219_v51  }
 0x229   :  { %231 = vperm.xlu2 %269, %v229_v53  }
 0x27b   :  { %v225_v56 = vpop.permute.xlu2 %224 }
 0x27c   :  { %v227_v59 = vmul.f32 %v225_v56, %v196_v58 }
 0x27e   :  { %v228_v61 = vadd.f32 %v227_v59, %v202_v60 }
 0x283   :  { %v232_v62 = vpop.permute.xlu2 %231 }
 0x284   :  { %vm233_vm7 = vcmp.eq.s32.totalorder %v232_v62, 1 }
 0x285   :  { %v234_v63 = vsel %vm233_vm7, %v228_v61, %v202_v60 }
 0x286   :  { %235 = vst [vmem:[#allocation14] sm:$0xff] %v234_v63 }
 0x287   :  { %246 = dma.vmem_to_hbm [thread:$0]  %s242_s4, 128, %s244_s19, [#allocation7]  }
 0x288   :  { %426 = dma.done.wait [#allocation7], 128  }
 0x289   :  { %427 = vsyncadd [#allocation7], 4294967168 }
 0x28a   :  { %251 = vsyncpa [#allocation6], 1 }
 0x28b   :  { %252 = vsyncpa [#allocation9], 1 }
 0x28c   :  { %253 = vsyncpa [#allocation12], 1 }
 0x28d   :  { %254 = vsyncpa [#allocation7], 1 }

</bundles_post_ra>
